<compile_context>
chip_gen: v5e
topology: v5e:2x2
jax: 0.10.0
libtpu: 0.0.40
codegen_flags: <defaults>
</compile_context>

<pallas_src>
import functools
import math

import jax
import jax.numpy as jnp
from jax.experimental import pallas as pl
from jax.experimental.pallas import tpu as pltpu


def _pick_tile(dim, candidates):
    """Largest candidate tile that evenly divides `dim`; falls back to full dim."""
    for c in candidates:
        if c <= dim and dim % c == 0:
            return c
    return dim


@functools.lru_cache(maxsize=1)
def _vmem_budget():
    """(vmem_limit_bytes, max_query_tile) tuned per TPU generation."""
    try:
        cap = int(pltpu.get_tpu_info().vmem_capacity_bytes)
    except Exception:
        cap = 0
    if cap >= 100 * 1024 * 1024:            # v5e / v6e: 128 MiB physical VMEM
        return 80 * 1024 * 1024, 256
    # v7x (64 MiB physical) or unknown: stay conservative.
    return 40 * 1024 * 1024, 128


def _block_spec(shape, index_map, *, single_buffer=False):
    """BlockSpec; grid-invariant blocks are single-buffered when supported."""
    if single_buffer:
        try:
            return pl.BlockSpec(shape, index_map, pipeline_mode=pl.Buffered(1))
        except Exception:
            pass
    return pl.BlockSpec(shape, index_map)


# --------------------------------------------------------------------------
# dense_pre_process: LayerNorm(x @ W + b), row-tiled + vocab(K)-tiled
# --------------------------------------------------------------------------

def _preprocess_kernel(x_ref, w_ref, b_ref, g_ref, beta_ref, o_ref, acc_ref, *, eps):
    @pl.when(pl.program_id(1) == 0)
    def _():
        acc_ref[...] = jnp.zeros_like(acc_ref)

    acc_ref[...] += jnp.dot(x_ref[...], w_ref[...],
                            preferred_element_type=jnp.float32)

    @pl.when(pl.program_id(1) == pl.num_programs(1) - 1)
    def _():
        y = acc_ref[...] + b_ref[...]
        mu = jnp.mean(y, axis=-1, keepdims=True)
        var = jnp.mean((y - mu) ** 2, axis=-1, keepdims=True)
        o_ref[...] = ((y - mu) * jax.lax.rsqrt(var + eps) * g_ref[...]
                      + beta_ref[...]).astype(o_ref.dtype)


def dense_pre_process(x2d, w, b, g, beta, *, eps=1e-5):
    R, V = x2d.shape
    H = w.shape[1]
    vmem_limit, _ = _vmem_budget()
    tm = _pick_tile(R, (512, 256, 128, 64, 32, 16, 8))
    tk = _pick_tile(V, (2048, 1024, 512, 256, 128))
    grid = (R // tm, V // tk)
    x_bf = x2d.astype(jnp.bfloat16)     # dominant HBM stream of this kernel: halve it
    cost = pl.CostEstimate(
        flops=int(2 * R * V * H), transcendentals=0,
        bytes_accessed=int(x_bf.nbytes + w.nbytes * (R // tm) + 2 * R * H))
    return pl.pallas_call(
        functools.partial(_preprocess_kernel, eps=eps),
        out_shape=jax.ShapeDtypeStruct((R, H), jnp.bfloat16),
        grid=grid,
        in_specs=[
            pl.BlockSpec((tm, tk), lambda i, k: (i, k)),
            pl.BlockSpec((tk, H), lambda i, k: (k, 0)),
            _block_spec((1, H), lambda i, k: (0, 0), single_buffer=True),
            _block_spec((1, H), lambda i, k: (0, 0), single_buffer=True),
            _block_spec((1, H), lambda i, k: (0, 0), single_buffer=True),
        ],
        out_specs=pl.BlockSpec((tm, H), lambda i, k: (i, 0)),
        scratch_shapes=[pltpu.VMEM((tm, H), jnp.float32)],
        compiler_params=pltpu.CompilerParams(
            dimension_semantics=("parallel", "arbitrary"),
            vmem_limit_bytes=vmem_limit),
        cost_estimate=cost,
    )(x_bf, w, b, g, beta)


# --------------------------------------------------------------------------
# Fused RoBERTa layer: MHA + residual LN + GELU FFN + residual LN
# --------------------------------------------------------------------------

def _layer_kernel(x_ref, wq_ref, bq_ref, wk_ref, bk_ref, wv_ref, bv_ref,
                  wo_ref, bo_ref, ln1_g_ref, ln1_b_ref,
                  w1_ref, b1_ref, w2_ref, b2_ref, ln2_g_ref, ln2_b_ref,
                  attn_ref, out_ref, k_scr, v_scr, *, num_heads, tq, eps):
    S = x_ref.shape[1]
    H = x_ref.shape[2]
    hd = H // num_heads
    scale = 1.0 / math.sqrt(hd)

    qi = pl.program_id(1)
    q_start = pl.multiple_of(qi * tq, tq)

    # K/V projections are query-tile invariant: compute once per batch element
    # (first qi step) into bf16 VMEM scratch; the qi axis is "arbitrary" so the
    # scratch persists across the remaining query tiles of this batch element.
    @pl.when(qi == 0)
    def _():
        x_bf = x_ref[0]                                  # (S, H) bf16, full sequence
        k = jnp.dot(x_bf, wk_ref[...], preferred_element_type=jnp.float32) + bk_ref[...]
        v = jnp.dot(x_bf, wv_ref[...], preferred_element_type=jnp.float32) + bv_ref[...]
        # cast to bf16 BEFORE the head-major relayout (half the copy bytes)
        k_scr[...] = k.astype(jnp.bfloat16).reshape(S, num_heads, hd).swapaxes(0, 1)
        v_scr[...] = v.astype(jnp.bfloat16).reshape(S, num_heads, hd).swapaxes(0, 1)

    xq_bf = x_ref[0, pl.ds(q_start, tq), :]              # (TQ, H) bf16 query tile

    # Q projection for this tile: bf16 MXU inputs, f32 accumulation.
    q = jnp.dot(xq_bf, wq_ref[...], preferred_element_type=jnp.float32) + bq_ref[...]
    qh = q.astype(jnp.bfloat16).reshape(tq, num_heads, hd).swapaxes(0, 1)   # (NH,TQ,hd)
    kh = k_scr[...]                                                          # (NH,S,hd)
    vh = v_scr[...]                                                          # (NH,S,hd)

    s = jnp.einsum('nqd,nkd->nqk', qh, kh,
                   preferred_element_type=jnp.float32) * scale              # (NH,TQ,S)
    m = jnp.max(s, axis=-1, keepdims=True)
    p = jnp.exp(s - m)
    p = p / jnp.sum(p, axis=-1, keepdims=True)           # exact softmax (matches torch)
    attn_ref[0] = p.astype(attn_ref.dtype)               # attn dropout is identity (eval)

    ctx = jnp.einsum('nqk,nkd->nqd', p.astype(jnp.bfloat16), vh,
                     preferred_element_type=jnp.float32)                    # (NH,TQ,hd)
    # Merge heads -> one (TQ,H)@(H,H) output projection (full MXU contraction depth).
    ctx_b = ctx.astype(jnp.bfloat16).swapaxes(0, 1).reshape(tq, H)
    attn_out = jnp.dot(ctx_b, wo_ref[...], preferred_element_type=jnp.float32) + bo_ref[...]

    # Residual + LayerNorm (eps=1e-12), f32 vector math.
    y = xq_bf.astype(jnp.float32) + attn_out
    mu = jnp.mean(y, axis=-1, keepdims=True)
    var = jnp.mean((y - mu) ** 2, axis=-1, keepdims=True)
    y = (y - mu) * jax.lax.rsqrt(var + eps) * ln1_g_ref[...] + ln1_b_ref[...]

    # FFN fused in the same kernel (no HBM round-trip of the activations).
    h1 = jnp.dot(y.astype(jnp.bfloat16), w1_ref[...],
                 preferred_element_type=jnp.float32) + b1_ref[...]
    h1 = jax.nn.gelu(h1, approximate=False)              # HF "gelu" = exact erf GELU
    o = jnp.dot(h1.astype(jnp.bfloat16), w2_ref[...],
                preferred_element_type=jnp.float32) + b2_ref[...]
    y2 = y + o
    mu2 = jnp.mean(y2, axis=-1, keepdims=True)
    var2 = jnp.mean((y2 - mu2) ** 2, axis=-1, keepdims=True)
    out_ref[0] = ((y2 - mu2) * jax.lax.rsqrt(var2 + eps) * ln2_g_ref[...]
                  + ln2_b_ref[...]).astype(out_ref.dtype)


def transformer_layer(x, wts, *, num_heads, eps=1e-12, attn_dtype=jnp.bfloat16):
    B, S, H = x.shape
    hd = H // num_heads
    inter = wts["w1"].shape[1]
    vmem_limit, max_tq = _vmem_budget()
    tq = _pick_tile(S, tuple(c for c in (256, 128, 64, 32, 16, 8) if c <= max_tq))
    grid = (B, S // tq)

    def const_spec(a):
        return _block_spec(a.shape, lambda b, qi: (0, 0), single_buffer=True)

    flops = B * (8 * S * H * H + 4 * S * S * H + 4 * S * H * inter)
    trans = B * (num_heads * S * S + S * inter)
    wbytes = sum(int(w.size) * w.dtype.itemsize for w in wts.values())
    attn_bytes = B * num_heads * S * S * jnp.dtype(attn_dtype).itemsize
    out_bytes = B * S * H * 2
    # x block is grid-invariant over qi -> fetched once per batch element;
    # weights are grid-invariant -> fetched once total.
    cost = pl.CostEstimate(
        flops=int(flops), transcendentals=int(trans),
        bytes_accessed=int(x.nbytes + wbytes + attn_bytes + out_bytes))

    attn, out = pl.pallas_call(
        functools.partial(_layer_kernel, num_heads=num_heads, tq=tq, eps=eps),
        out_shape=(jax.ShapeDtypeStruct((B, num_heads, S, S), attn_dtype),
                   jax.ShapeDtypeStruct((B, S, H), jnp.bfloat16)),
        grid=grid,
        in_specs=[pl.BlockSpec((1, S, H), lambda b, qi: (b, 0, 0)),
                  const_spec(wts["wq"]), const_spec(wts["bq"]),
                  const_spec(wts["wk"]), const_spec(wts["bk"]),
                  const_spec(wts["wv"]), const_spec(wts["bv"]),
                  const_spec(wts["wo"]), const_spec(wts["bo"]),
                  const_spec(wts["ln1_g"]), const_spec(wts["ln1_b"]),
                  const_spec(wts["w1"]), const_spec(wts["b1"]),
                  const_spec(wts["w2"]), const_spec(wts["b2"]),
                  const_spec(wts["ln2_g"]), const_spec(wts["ln2_b"])],
        out_specs=(pl.BlockSpec((1, num_heads, tq, S), lambda b, qi: (b, 0, qi, 0)),
                   pl.BlockSpec((1, tq, H), lambda b, qi: (b, qi, 0))),
        scratch_shapes=[pltpu.VMEM((num_heads, S, hd), jnp.bfloat16),
                        pltpu.VMEM((num_heads, S, hd), jnp.bfloat16)],
        compiler_params=pltpu.CompilerParams(
            # qi must be "arbitrary" so the carried K/V scratch is legal;
            # batch stays "parallel" for megacore sharding.
            dimension_semantics=("parallel", "arbitrary"),
            vmem_limit_bytes=vmem_limit),
        cost_estimate=cost,
    )(x, wts["wq"], wts["bq"], wts["wk"], wts["bk"], wts["wv"], wts["bv"],
      wts["wo"], wts["bo"], wts["ln1_g"], wts["ln1_b"],
      wts["w1"], wts["b1"], wts["w2"], wts["b2"], wts["ln2_g"], wts["ln2_b"])
    return attn, out


# --------------------------------------------------------------------------
# Pooler: tanh(x[:,0] @ W + b), row-tiled
# --------------------------------------------------------------------------

def _pooler_kernel(x_ref, w_ref, b_ref, o_ref):
    o_ref[...] = jnp.tanh(
        jnp.dot(x_ref[...].astype(jnp.bfloat16), w_ref[...],
                preferred_element_type=jnp.float32) + b_ref[...])


def pooler(x, w, b):
    R, H = x.shape
    vmem_limit, _ = _vmem_budget()
    tm = _pick_tile(R, (512, 256, 128, 64, 32, 16, 8))
    return pl.pallas_call(
        _pooler_kernel,
        out_shape=jax.ShapeDtypeStruct((R, H), jnp.float32),
        grid=(R // tm,),
        in_specs=[pl.BlockSpec((tm, H), lambda i: (i, 0)),
                  _block_spec((H, H), lambda i: (0, 0), single_buffer=True),
                  _block_spec((1, H), lambda i: (0, 0), single_buffer=True)],
        out_specs=pl.BlockSpec((tm, H), lambda i: (i, 0)),
        compiler_params=pltpu.CompilerParams(
            dimension_semantics=("parallel",),
            vmem_limit_bytes=vmem_limit),
    )(x, w, b)


# --------------------------------------------------------------------------
# Parameter construction + full forward
# --------------------------------------------------------------------------

def init_params(key, vocab, hidden, n_heads, n_layers, intermediate):
    def dense(k, fan_in, fan_out):
        # MXU matmul weights stored directly in bf16 (x @ W layout, == weight.T)
        return (jax.random.normal(k, (fan_in, fan_out), jnp.float32) * 0.02
                ).astype(jnp.bfloat16)

    keys = iter(jax.random.split(key, 4 + n_layers * 8))
    params = {
        "pre_w": dense(next(keys), vocab, hidden),
        "pre_b": jnp.zeros((1, hidden), jnp.float32),
        "pre_g": jnp.ones((1, hidden), jnp.float32),
        "pre_beta": jnp.zeros((1, hidden), jnp.float32),
        "pool_w": dense(next(keys), hidden, hidden),
        "pool_b": jnp.zeros((1, hidden), jnp.float32),
        "layers": [],
    }
    for _ in range(n_layers):
        layer = {
            "wq": dense(next(keys), hidden, hidden), "bq": jnp.zeros((1, hidden), jnp.float32),
            "wk": dense(next(keys), hidden, hidden), "bk": jnp.zeros((1, hidden), jnp.float32),
            "wv": dense(next(keys), hidden, hidden), "bv": jnp.zeros((1, hidden), jnp.float32),
            "wo": dense(next(keys), hidden, hidden), "bo": jnp.zeros((1, hidden), jnp.float32),
            "ln1_g": jnp.ones((1, hidden), jnp.float32),
            "ln1_b": jnp.zeros((1, hidden), jnp.float32),
            "w1": dense(next(keys), hidden, intermediate),
            "b1": jnp.zeros((1, intermediate), jnp.float32),
            "w2": dense(next(keys), intermediate, hidden),
            "b2": jnp.zeros((1, hidden), jnp.float32),
            "ln2_g": jnp.ones((1, hidden), jnp.float32),
            "ln2_b": jnp.zeros((1, hidden), jnp.float32),
        }
        params["layers"].append(layer)
    return params


def mcbert_encoder_forward(inputs, params, num_heads, out_as_dict=True):
    B, S, V = inputs.shape
    H = params["pre_w"].shape[1]

    # dense_pre_process: Linear + LayerNorm(1e-5); Dropout(0.1) is identity in eval.
    pre = dense_pre_process(inputs.reshape(B * S, V), params["pre_w"], params["pre_b"],
                            params["pre_g"], params["pre_beta"], eps=1e-5).reshape(B, S, H)

    hidden_states = [pre]
    attentions = []
    h = pre
    for layer in params["layers"]:
        attn_probs, h = transformer_layer(h, layer, num_heads=num_heads, eps=1e-12)
        hidden_states.append(h)
        attentions.append(attn_probs)

    encoder_states = tuple(hidden_states[:-1])
    encoder_out = hidden_states[-1]
    pooler_output = pooler(encoder_out[:, 0, :], params["pool_w"], params["pool_b"])

    if out_as_dict:
        return {
            "encoder_states": encoder_states,
            "encoder_out": encoder_out,
            "attentions": tuple(attentions),
            "pooler_output": pooler_output,
        }
    return encoder_out.astype(jnp.float32).mean(axis=1)


# --------------------------------------------------------------------------

if __name__ == "__main__":
    # Small synthetic config consistent with the module:
    #   vocab_size=16, embed_dim=hidden_size=32, num_attention_heads=4,
    #   num_hidden_layers=2, intermediate=4*hidden=128.
    B, S, V, H, NH, NL, I = 2, 8, 16, 32, 4, 2, 128

    root = jax.random.PRNGKey(0)
    k_in, k_par = jax.random.split(root)
    inputs = jax.random.normal(k_in, (B, S, V), jnp.float32)
    params = init_params(k_par, V, H, NH, NL, I)

    out = mcbert_encoder_forward(inputs, params, NH, out_as_dict=True)

    jax.block_until_ready(out["encoder_out"])
    jax.block_until_ready(out["pooler_output"])
    for a in out["attentions"]:
        jax.block_until_ready(a)
    for st in out["encoder_states"]:
        jax.block_until_ready(st)

    assert out["encoder_out"].shape == (B, S, H)
    assert out["pooler_output"].shape == (B, H)
    assert len(out["encoder_states"]) == NL
    assert all(a.shape == (B, NH, S, S) for a in out["attentions"])
    # attention rows sum to ~1 (exact softmax, bf16 storage rounding only)
    attn0 = out["attentions"][0].astype(jnp.float32)
    assert bool(jnp.allclose(attn0.sum(-1), 1.0, atol=1e-2))
    assert bool(jnp.all(jnp.isfinite(out["encoder_out"].astype(jnp.float32))))

    print("KERNEL_OK")
</pallas_src>

<mosaic_0001>
module attributes {stable_mosaic.version = 11 : i64} {
  func.func @_preprocess_kernel(%arg0: i32, %arg1: i32, %arg2: memref<16x16xbf16, #tpu.memory_space<vmem>>, %arg3: memref<16x32xbf16, #tpu.memory_space<vmem>>, %arg4: memref<1x32xf32, #tpu.memory_space<vmem>>, %arg5: memref<1x32xf32, #tpu.memory_space<vmem>>, %arg6: memref<1x32xf32, #tpu.memory_space<vmem>>, %arg7: memref<16x32xbf16, #tpu.memory_space<vmem>>, %arg8: memref<16x32xf32, #tpu.memory_space<vmem>>) attributes {dimension_semantics = [#tpu.dimension_semantics<parallel>, #tpu.dimension_semantics<arbitrary>], iteration_bounds = array<i64: 1, 1>, scalar_prefetch = 0 : i64, scratch_operands = 1 : i64, tpu.core_type = #tpu.core_type<tc>, window_params = [{transform_indices = @transform_0, window_bounds = array<i64: 16, 16>}, {transform_indices = @transform_1, window_bounds = array<i64: 16, 32>}, {pipeline_mode = #tpu.pipeline_mode<synchronous>, transform_indices = @transform_2, window_bounds = array<i64: 1, 32>}, {pipeline_mode = #tpu.pipeline_mode<synchronous>, transform_indices = @transform_3, window_bounds = array<i64: 1, 32>}, {pipeline_mode = #tpu.pipeline_mode<synchronous>, transform_indices = @transform_4, window_bounds = array<i64: 1, 32>}, {transform_indices = @transform_5, window_bounds = array<i64: 16, 32>}]} {
    %c0_i32 = arith.constant 0 : i32
    %0 = arith.cmpi eq, %arg1, %c0_i32 : i32
    %1 = arith.extui %0 : i1 to i32
    %c0_i32_0 = arith.constant 0 : i32
    %2 = arith.cmpi ne, %1, %c0_i32_0 : i32
    scf.if %2 {
      %cst_10 = arith.constant 0.000000e+00 : f32
      %12 = vector.broadcast %cst_10 : f32 to vector<16x32xf32>
      %c0_11 = arith.constant 0 : index
      %c0_12 = arith.constant 0 : index
      %13 = vector.load %arg8[%c0_11, %c0_12] : memref<16x32xf32, #tpu.memory_space<vmem>>, vector<16x32xf32>
      tpu.vector_store %arg8[%c0_11, %c0_12], %12 {strides = array<i32>} : memref<16x32xf32, #tpu.memory_space<vmem>>, vector<16x32xf32>,
    } else {
    }
    %c0 = arith.constant 0 : index
    %c0_1 = arith.constant 0 : index
    %3 = vector.load %arg8[%c0, %c0_1] : memref<16x32xf32, #tpu.memory_space<vmem>>, vector<16x32xf32>
    %c0_2 = arith.constant 0 : index
    %c0_3 = arith.constant 0 : index
    %4 = vector.load %arg2[%c0_2, %c0_3] : memref<16x16xbf16, #tpu.memory_space<vmem>>, vector<16x16xbf16>
    %c0_4 = arith.constant 0 : index
    %c0_5 = arith.constant 0 : index
    %5 = vector.load %arg3[%c0_4, %c0_5] : memref<16x32xbf16, #tpu.memory_space<vmem>>, vector<16x32xbf16>
    %cst = arith.constant dense<0.000000e+00> : vector<16x32xf32>
    %6 = tpu.matmul %4, %5, %cst {dimension_numbers = #tpu.dot_dimension_numbers<[1], [0], [0], [1], [0, 0, 1, 1], [], []>} : vector<16x16xbf16>, vector<16x32xbf16>, vector<16x32xf32> -> vector<16x32xf32>
    %7 = arith.addf %3, %6 : vector<16x32xf32>
    %c0_6 = arith.constant 0 : index
    %c0_7 = arith.constant 0 : index
    %8 = vector.load %arg8[%c0_6, %c0_7] : memref<16x32xf32, #tpu.memory_space<vmem>>, vector<16x32xf32>
    tpu.vector_store %arg8[%c0_6, %c0_7], %7 {strides = array<i32>} : memref<16x32xf32, #tpu.memory_space<vmem>>, vector<16x32xf32>,
    %c0_i32_8 = arith.constant 0 : i32
    %9 = arith.cmpi eq, %arg1, %c0_i32_8 : i32
    %10 = arith.extui %9 : i1 to i32
    %c0_i32_9 = arith.constant 0 : i32
    %11 = arith.cmpi ne, %10, %c0_i32_9 : i32
    scf.if %11 {
      %c0_10 = arith.constant 0 : index
      %c0_11 = arith.constant 0 : index
      %12 = vector.load %arg8[%c0_10, %c0_11] : memref<16x32xf32, #tpu.memory_space<vmem>>, vector<16x32xf32>
      %c0_12 = arith.constant 0 : index
      %c0_13 = arith.constant 0 : index
      %13 = vector.load %arg4[%c0_12, %c0_13] : memref<1x32xf32, #tpu.memory_space<vmem>>, vector<1x32xf32>
      %14 = vector.broadcast %13 : vector<1x32xf32> to vector<16x32xf32>
      %15 = arith.addf %12, %14 : vector<16x32xf32>
      %cst_14 = arith.constant dense<0.000000e+00> : vector<16xf32>
      %16 = vector.multi_reduction <add>, %15, %cst_14 [1] : vector<16x32xf32> to vector<16xf32>
      %17 = vector.shape_cast %16 : vector<16xf32> to vector<16x1xf32>
      %cst_15 = arith.constant 3.200000e+01 : f32
      %18 = vector.broadcast %cst_15 : f32 to vector<16x1xf32>
      %19 = arith.divf %17, %18 : vector<16x1xf32>
      %20 = vector.broadcast %19 : vector<16x1xf32> to vector<16x32xf32>
      %21 = arith.subf %15, %20 : vector<16x32xf32>
      %22 = arith.mulf %21, %21 : vector<16x32xf32>
      %cst_16 = arith.constant dense<0.000000e+00> : vector<16xf32>
      %23 = vector.multi_reduction <add>, %22, %cst_16 [1] : vector<16x32xf32> to vector<16xf32>
      %24 = vector.shape_cast %23 : vector<16xf32> to vector<16x1xf32>
      %cst_17 = arith.constant 3.200000e+01 : f32
      %25 = vector.broadcast %cst_17 : f32 to vector<16x1xf32>
      %26 = arith.divf %24, %25 : vector<16x1xf32>
      %27 = vector.broadcast %19 : vector<16x1xf32> to vector<16x32xf32>
      %28 = arith.subf %15, %27 : vector<16x32xf32>
      %cst_18 = arith.constant 9.99999974E-6 : f32
      %29 = vector.broadcast %cst_18 : f32 to vector<16x1xf32>
      %30 = arith.addf %26, %29 : vector<16x1xf32>
      %31 = math.rsqrt %30 : vector<16x1xf32>
      %32 = vector.broadcast %31 : vector<16x1xf32> to vector<16x32xf32>
      %33 = arith.mulf %28, %32 : vector<16x32xf32>
      %c0_19 = arith.constant 0 : index
      %c0_20 = arith.constant 0 : index
      %34 = vector.load %arg5[%c0_19, %c0_20] : memref<1x32xf32, #tpu.memory_space<vmem>>, vector<1x32xf32>
      %35 = vector.broadcast %34 : vector<1x32xf32> to vector<16x32xf32>
      %36 = arith.mulf %33, %35 : vector<16x32xf32>
      %c0_21 = arith.constant 0 : index
      %c0_22 = arith.constant 0 : index
      %37 = vector.load %arg6[%c0_21, %c0_22] : memref<1x32xf32, #tpu.memory_space<vmem>>, vector<1x32xf32>
      %38 = vector.broadcast %37 : vector<1x32xf32> to vector<16x32xf32>
      %39 = arith.addf %36, %38 : vector<16x32xf32>
      %40 = arith.truncf %39 : vector<16x32xf32> to vector<16x32xbf16>
      %c0_23 = arith.constant 0 : index
      %c0_24 = arith.constant 0 : index
      %41 = vector.load %arg7[%c0_23, %c0_24] : memref<16x32xbf16, #tpu.memory_space<vmem>>, vector<16x32xbf16>
      tpu.vector_store %arg7[%c0_23, %c0_24], %40 {strides = array<i32>} : memref<16x32xbf16, #tpu.memory_space<vmem>>, vector<16x32xbf16>,
    } else {
    }
    return
  }
  func.func @transform_0(%arg0: i32, %arg1: i32) -> (i32, i32) {
    %c0_i32 = arith.constant 0 : i32
    return %arg0, %arg1 : i32, i32
  }
  func.func @transform_1(%arg0: i32, %arg1: i32) -> (i32, i32) {
    %c0_i32 = arith.constant 0 : i32
    %c0_i32_0 = arith.constant 0 : i32
    return %arg1, %c0_i32 : i32, i32
  }
  func.func @transform_2(%arg0: i32, %arg1: i32) -> (i32, i32) {
    %c0_i32 = arith.constant 0 : i32
    %c0_i32_0 = arith.constant 0 : i32
    %c0_i32_1 = arith.constant 0 : i32
    return %c0_i32, %c0_i32_0 : i32, i32
  }
  func.func @transform_3(%arg0: i32, %arg1: i32) -> (i32, i32) {
    %c0_i32 = arith.constant 0 : i32
    %c0_i32_0 = arith.constant 0 : i32
    %c0_i32_1 = arith.constant 0 : i32
    return %c0_i32, %c0_i32_0 : i32, i32
  }
  func.func @transform_4(%arg0: i32, %arg1: i32) -> (i32, i32) {
    %c0_i32 = arith.constant 0 : i32
    %c0_i32_0 = arith.constant 0 : i32
    %c0_i32_1 = arith.constant 0 : i32
    return %c0_i32, %c0_i32_0 : i32, i32
  }
  func.func @transform_5(%arg0: i32, %arg1: i32) -> (i32, i32) {
    %c0_i32 = arith.constant 0 : i32
    %c0_i32_0 = arith.constant 0 : i32
    return %arg0, %c0_i32 : i32, i32
  }
}

</mosaic_0001>

<bundles_post_ra>
// kernel: tpu_custom_call.1
= control target key start
LH: loop header
LB: loop body
LE: loop exit
PB: predicated region body
PF: predicated region fallthrough
CT: control target
= control target key end

     0   :  { %10 = vsyncpa [#allocation4], 0  ;;  %s377_s0 = inlined_call_operand.hbm [shape: bf16[16,16], index: 0, kind: input, shape index: {}]   ;;  %s378_s1 = inlined_call_operand.hbm [shape: bf16[16,32], index: 1, kind: input, shape index: {}]   ;;  %s379_s2 = inlined_call_operand.vmem [shape: f32[1,32], index: 2, kind: input, shape index: {}]   ;;  %s380_s3 = inlined_call_operand.vmem [shape: f32[1,32], index: 3, kind: input, shape index: {}]   ;;  %s381_s4 = inlined_call_operand.vmem [shape: f32[1,32], index: 4, kind: input, shape index: {}]   ;;  %s382_s5 = inlined_call_operand.hbm [shape: bf16[16,32], index: 5, kind: output, shape index: {}]  }
   0x1   :  { %11 = vsyncpa [#allocation7], 0 }
   0x2   :  { %12 = vsyncpa [#allocation5], 0  ;;  %s17_s20 = sshll.u32 %s377_s0, 4  ;;  %s305_s21 = smov [#allocation3]   ;;  %s18_s20 = int_to_ptr.hbm [resolvable:$true] %s17_s20 }
   0x3   :  { %s19_s22 = sshll.u32 %s305_s21, 4  ;;  %s30_s25 = sshll.u32 %s378_s1, 4  ;;  %s20_s22 = int_to_ptr.vmem [resolvable:$true] %s19_s22  ;;  %s31_s25 = int_to_ptr.hbm [resolvable:$true] %s30_s25 }
   0x4   :  { %s306_s26 = smov 64   ;;  %s307_s27 = smov 4  }
   0x5   :  { %25 = dma.hbm_to_vmem [thread:$0]  %s18_s20, 128, %s20_s22, [#allocation4], %s306_s26, %s306_s26, %s307_s27  }
   0x6   :  { %s308_s28 = smov [#allocation6]  }
   0x7   :  { %s32_s29 = sshll.u32 %s308_s28, 4  ;;  %s33_s29 = int_to_ptr.vmem [resolvable:$true] %s32_s29 }
   0x8   :  { %38 = dma.hbm_to_vmem [thread:$0]  %s31_s25, 128, %s33_s29, [#allocation7], %s306_s26, %s306_s26, %s307_s27  }
   0x9   :  { %299 = dma.done.wait [#allocation4], 128  }
   0xa   :  { %300 = vsyncadd [#allocation4], 4294967168 }
   0xb   :  { %301 = dma.done.wait [#allocation7], 128  }
   0xc   :  { %302 = vsyncadd [#allocation7], 4294967168  ;;  %vm58_vm0 = vcmask 261120   ;;  %v309_v0 = vmov 0.0   ;;  %v210_v1 = vld [vmem:[#allocation6] sm:$0xff]  ;;  %v209_v2 = vld [vmem:[#allocation3] sm:$0xff] }
   0xd   :  { %59 = vst.msk [vmem:[#allocation2] sm:$0xff] %vm58_vm0, %v309_v0  ;;  %89 = vmatpush.bf16.msra.mxu0 %v210_v1  ;;  %vm78_vm1 = vcmask 130048   ;;  %v218_v7 = vld [vmem:[%s379_s2] ss:$0 sm:$0xff]  ;;  %v310_v16 = vmov 32.0   ;;  %vm177_vm8 = vcmask 257024  }
   0xe   :  { %60 = vst.msk [vmem:[#allocation2 + $0x8] sm:$0xff] %vm58_vm0, %v309_v0  ;;  %221 = vrcp.f32 %v310_v16  ;;  %v219_v47 = vld [vmem:[%s380_s3] ss:$0 sm:$0xff]  ;;  %s311_s3 = smov [#allocation8]  }
   0xf   :  { %v220_v51 = vld [vmem:[%s381_s4] ss:$0 sm:$0xff]  ;;  %s184_s8 = sshll.u32 %s311_s3, 4  ;;  %s186_s4 = sshll.u32 %s382_s5, 4  ;;  %s185_s8 = int_to_ptr.vmem [resolvable:$true] %s184_s8  ;;  %s187_s4 = int_to_ptr.hbm [resolvable:$true] %s186_s4 }
  0x10   :  { %208 = vmatmul.msk.bf16.vlgmr.msra.gmra.mxu0 %vm78_vm1, %v209_v2 }
  0x14   :  { %v61_v3 = vld [vmem:[#allocation2] sm:$0xff]  ;;  %v222_v17 = vpop.eup %221 }
  0x15   :  { %v62_v6 = vld [vmem:[#allocation2 + $0x8] sm:$0xff]  ;;  %v119_v18 = vmul.f32 32.0, %v222_v17  ;;  %vm123_vm2 = vweird.f32 %v222_v17 }
  0x17   :  { %v120_v19 = vsub.f32 1.0, %v119_v18 }
  0x19   :  { %v121_v20 = vmul.f32 %v222_v17, %v120_v19 }
  0x1b   :  { %v122_v21 = vadd.f32 %v222_v17, %v121_v20 }
  0x1d   :  { %v124_v22 = vsel %vm123_vm2, %v222_v17, %v122_v21 }
  0x8d   :  { %v91_v4 = vpop.f32.mrf.mxu0 }
  0x8e   :  { %v96_v5 = vadd.f32 %v91_v4, %v61_v3 }
  0x90   :  { %99 = vst.msk [vmem:[#allocation2] sm:$0xff] %vm58_vm0, %v96_v5 }
  0x95   :  { %v93_v8 = vpop.f32.mrf.mxu0 }
  0x96   :  { %v97_v9 = vadd.f32 %v93_v8, %v62_v6 }
  0x97   :  { %v104_v10 = vld [vmem:[#allocation2] sm:$0xff] }
  0x98   :  { %100 = vst.msk [vmem:[#allocation2 + $0x8] sm:$0xff] %vm58_vm0, %v97_v9  ;;  %v110_v11 = vadd.f32 %v218_v7, %v104_v10 }
  0x9a   :  { %v112_v12 = vsel %vm58_vm0, %v110_v11, 0.0 }
  0x9b   :  { %113 = vadd.xlane.f32.xlu0 %v112_v12 }
  0x9f   :  { %v105_v13 = vld [vmem:[#allocation2 + $0x8] sm:$0xff] }
  0xa0   :  { %v111_v14 = vadd.f32 %v218_v7, %v105_v13 }
  0xa2   :  { %v115_v15 = vsel %vm58_vm0, %v111_v14, 0.0 }
  0xa3   :  { %116 = vadd.xlane.f32.xlu0 %v115_v15 }
 0x10e   :  { %v114_v23 = vpop.xlane.xlu0 %113 }
 0x10f   :  { %v125_v24 = vmul.f32 %v124_v22, %v114_v23 }
 0x111   :  { %v127_v25 = vsub.f32 %v110_v11, %v125_v24 }
 0x113   :  { %v129_v26 = vmul.f32 %v127_v25, %v127_v25 }
 0x115   :  { %v131_v27 = vsel %vm58_vm0, %v129_v26, 0.0 }
 0x116   :  { %132 = vadd.xlane.f32.xlu1 %v131_v27  ;;  %v117_v28 = vpop.xlane.xlu0 %116 }
 0x117   :  { %v126_v29 = vmul.f32 %v124_v22, %v117_v28 }
 0x119   :  { %v128_v30 = vsub.f32 %v111_v14, %v126_v29 }
 0x11b   :  { %v130_v31 = vmul.f32 %v128_v30, %v128_v30 }
 0x11d   :  { %v134_v32 = vsel %vm58_vm0, %v130_v31, 0.0 }
 0x11e   :  { %135 = vadd.xlane.f32.xlu1 %v134_v32 }
 0x189   :  { %v133_v33 = vpop.xlane.xlu1 %132 }
 0x18a   :  { %v137_v34 = vmul.f32 %v133_v33, %v124_v22 }
 0x18c   :  { %v139_v35 = vadd.f32 1e-05, %v137_v34 }
 0x18e   :  { %223 = vrsqrt.f32 %v139_v35  ;;  %vm147_vm4 = vweird.f32 %v139_v35 }
 0x191   :  { %v136_v36 = vpop.xlane.xlu1 %135 }
 0x192   :  { %v138_v37 = vmul.f32 %v136_v36, %v124_v22 }
 0x194   :  { %v224_v38 = vpop.eup %223  ;;  %v140_v39 = vadd.f32 1e-05, %v138_v37 }
 0x195   :  { %v142_v40 = vmul.f32 %v224_v38, %v139_v35  ;;  %vm148_vm3 = vweird.f32 %v224_v38 }
 0x196   :  { %225 = vrsqrt.f32 %v140_v39  ;;  %vm149_vm5 = vmor %vm147_vm4, %vm148_vm3  ;;  %vm157_vm7 = vweird.f32 %v140_v39 }
 0x197   :  { %v143_v41 = vmul.f32 %v224_v38, %v142_v40 }
 0x199   :  { %v144_v42 = vmul.f32 0.5, %v143_v41 }
 0x19b   :  { %v145_v43 = vsub.f32 1.5, %v144_v42 }
 0x19c   :  { %v226_v44 = vpop.eup %225 }
 0x19d   :  { %v146_v45 = vmul.f32 %v224_v38, %v145_v43  ;;  %v152_v46 = vmul.f32 %v226_v44, %v140_v39  ;;  %vm158_vm6 = vweird.f32 %v226_v44 }
 0x19e   :  { %vm159_vm9 = vmor %vm157_vm7, %vm158_vm6 }
 0x19f   :  { %v150_v48 = vsel %vm149_vm5, %v224_v38, %v146_v45  ;;  %v153_v49 = vmul.f32 %v226_v44, %v152_v46 }
 0x1a0   :  { %v161_v50 = vmul.f32 %v150_v48, %v127_v25 }
 0x1a1   :  { %v154_v52 = vmul.f32 0.5, %v153_v49 }
 0x1a2   :  { %v167_v53 = vmul.f32 %v219_v47, %v161_v50 }
 0x1a3   :  { %v155_v54 = vsub.f32 1.5, %v154_v52 }
 0x1a4   :  { %v173_v55 = vadd.f32 %v220_v51, %v167_v53 }
 0x1a5   :  { %v156_v56 = vmul.f32 %v226_v44, %v155_v54 }
 0x1a6   :  { %v175_v57 = vpack.c.bf16 %v173_v55, %v173_v55 }
 0x1a7   :  { %v160_v58 = vsel %vm159_vm9, %v226_v44, %v156_v56 }
 0x1a8   :  { %v162_v59 = vmul.f32 %v160_v58, %v128_v30  ;;  %178 = vst.msk [vmem:[#allocation8] sm:$0xf] %vm177_vm8, %v175_v57 }
 0x1aa   :  { %v168_v60 = vmul.f32 %v219_v47, %v162_v59 }
 0x1ac   :  { %v174_v61 = vadd.f32 %v220_v51, %v168_v60 }
 0x1ae   :  { %v176_v62 = vpack.c.bf16 %v174_v61, %v174_v61 }
 0x1b0   :  { %179 = vst.msk [vmem:[#allocation8 + $0x4] sm:$0xf] %vm177_vm8, %v176_v62 }
 0x1b1   :  { %192 = dma.vmem_to_hbm [thread:$0]  %s185_s8, 128, %s187_s4, [#allocation5], %s306_s26, %s306_s26, %s307_s27  }
 0x1b2   :  { %303 = dma.done.wait [#allocation5], 128  }
 0x1b3   :  { %304 = vsyncadd [#allocation5], 4294967168 }
 0x1b4   :  { %197 = vsyncpa [#allocation4], 1 }
 0x1b5   :  { %198 = vsyncpa [#allocation7], 1 }
 0x1b6   :  { %199 = vsyncpa [#allocation5], 1 }

</bundles_post_ra>
